<compile_context>
chip_gen: v7x
topology: tpu7x:2x2x1
jax: 0.10.0
libtpu: 0.0.40
codegen_flags: <defaults>
</compile_context>

<pallas_src>
import jax
import jax.numpy as jnp
from jax.experimental import pallas as pl
from jax.experimental.pallas import tpu as pltpu


def sampling_kernel(mean_ref, logvar_ref, eps_ref, o_ref):
    mean = mean_ref[...].astype(jnp.float32)
    logvar = logvar_ref[...].astype(jnp.float32)
    eps = eps_ref[...].astype(jnp.float32)
    std = jnp.exp(0.5 * logvar)                       # EUP; mul/add are free filler
    o_ref[...] = (mean + std * eps).astype(o_ref.dtype)


def _choose_tile_b(B, half, vmem_budget_bytes=12 * 1024 * 1024):
    """Largest batch tile s.t. 4 live f32 tiles x 2 buffers fit the VMEM budget.

    Budget is conservative enough for v5e's 16 MiB default scoped VMEM and
    v7x's 32 MiB scoped / 64 MiB physical VMEM.
    """
    bytes_per_row = 4 * 2 * half * 4                  # 4 arrays * 2 bufs * f32
    cap = max(8, vmem_budget_bytes // bytes_per_row)
    tile_b = min(B, 1024, cap)
    tile_b = max(8, (tile_b // 8) * 8)                # sublane-aligned
    while B % tile_b != 0 and tile_b > 8:             # clean (non-ragged) grid
        tile_b -= 8
    if B % tile_b != 0:
        tile_b = B
    return tile_b


def sampling_layer(x, key, *, tile_b=None):
    """x: (batch, latent_dim) -> (batch, latent_dim // 2) reparameterized sample."""
    B, L = x.shape
    assert L % 2 == 0, "latent_dim must be even"
    half = L // 2

    # Gaussian noise generated outside the kernel (deterministic given `key`).
    eps = jax.random.normal(key, (B, half), dtype=jnp.float32)

    if tile_b is None or B % tile_b != 0:
        tile_b = _choose_tile_b(B, half)
    grid = (B // tile_b,)

    if half % 128 == 0:
        # Lane-aligned: split mean/log_var purely in the DMA via index_maps
        # (block index 0 / 1 along the lane axis of the same array).
        mean_in, logvar_in = x, x
        mean_spec = pl.BlockSpec((tile_b, half), lambda i: (i, 0))
        logvar_spec = pl.BlockSpec((tile_b, half), lambda i: (i, 1))
    else:
        # Non-128-aligned half: split in the wrapper (one extra XLA copy) so the
        # kernel still only ever sees lane-contiguous (tile_b, half) tiles.
        mean_in, logvar_in = x[:, :half], x[:, half:]
        mean_spec = pl.BlockSpec((tile_b, half), lambda i: (i, 0))
        logvar_spec = pl.BlockSpec((tile_b, half), lambda i: (i, 0))

    eps_spec = pl.BlockSpec((tile_b, half), lambda i: (i, 0))
    out_spec = pl.BlockSpec((tile_b, half), lambda i: (i, 0))

    return pl.pallas_call(
        sampling_kernel,
        out_shape=jax.ShapeDtypeStruct((B, half), x.dtype),
        grid_spec=pltpu.PrefetchScalarGridSpec(
            num_scalar_prefetch=0,
            grid=grid,
            in_specs=[mean_spec, logvar_spec, eps_spec],
            out_specs=out_spec,
        ),
        compiler_params=pltpu.CompilerParams(
            dimension_semantics=("parallel",),        # megacore sharding on v7x
        ),
    )(mean_in, logvar_in, eps)


if __name__ == "__main__":
    key = jax.random.PRNGKey(0)
    kx, keps = jax.random.split(key)

    batch, latent_dim = 256, 256                      # half = 128 (lane-dense)
    half = latent_dim // 2
    x = jax.random.normal(kx, (batch, latent_dim), dtype=jnp.float32)

    out = sampling_layer(x, keps, tile_b=64)          # grid of 4 batch tiles
    out = jax.block_until_ready(out)

    # Reference: same eps stream the wrapper draws.
    eps = jax.random.normal(keps, (batch, half), dtype=jnp.float32)
    ref = x[:, :half] + jnp.exp(0.5 * x[:, half:]) * eps

    assert out.shape == (batch, half), out.shape
    assert out.dtype == jnp.float32, out.dtype
    assert bool(jnp.all(jnp.isfinite(out)))
    assert bool(jnp.allclose(out, ref, atol=1e-5, rtol=1e-5))

    print("KERNEL_OK")
</pallas_src>

<mosaic_0001>
module attributes {stable_mosaic.version = 11 : i64} {
  func.func @sampling_kernel(%arg0: i32, %arg1: memref<64x128xf32, #tpu.memory_space<vmem>>, %arg2: memref<64x128xf32, #tpu.memory_space<vmem>>, %arg3: memref<64x128xf32, #tpu.memory_space<vmem>>, %arg4: memref<64x128xf32, #tpu.memory_space<vmem>>) attributes {dimension_semantics = [#tpu.dimension_semantics<parallel>], iteration_bounds = array<i64: 4>, scalar_prefetch = 0 : i64, scratch_operands = 0 : i64, tpu.core_type = #tpu.core_type<tc>, window_params = [{transform_indices = @transform_0, window_bounds = array<i64: 64, 128>}, {transform_indices = @transform_1, window_bounds = array<i64: 64, 128>}, {transform_indices = @transform_2, window_bounds = array<i64: 64, 128>}, {transform_indices = @transform_3, window_bounds = array<i64: 64, 128>}]} {
    %c0 = arith.constant 0 : index
    %c0_0 = arith.constant 0 : index
    %0 = vector.load %arg1[%c0, %c0_0] : memref<64x128xf32, #tpu.memory_space<vmem>>, vector<64x128xf32>
    %c0_1 = arith.constant 0 : index
    %c0_2 = arith.constant 0 : index
    %1 = vector.load %arg2[%c0_1, %c0_2] : memref<64x128xf32, #tpu.memory_space<vmem>>, vector<64x128xf32>
    %c0_3 = arith.constant 0 : index
    %c0_4 = arith.constant 0 : index
    %2 = vector.load %arg3[%c0_3, %c0_4] : memref<64x128xf32, #tpu.memory_space<vmem>>, vector<64x128xf32>
    %cst = arith.constant 5.000000e-01 : f32
    %3 = vector.broadcast %cst : f32 to vector<64x128xf32>
    %4 = arith.mulf %3, %1 : vector<64x128xf32>
    %5 = math.exp %4 : vector<64x128xf32>
    %6 = arith.mulf %5, %2 : vector<64x128xf32>
    %7 = arith.addf %0, %6 : vector<64x128xf32>
    %c0_5 = arith.constant 0 : index
    %c0_6 = arith.constant 0 : index
    %8 = vector.load %arg4[%c0_5, %c0_6] : memref<64x128xf32, #tpu.memory_space<vmem>>, vector<64x128xf32>
    tpu.vector_store %arg4[%c0_5, %c0_6], %7 {strides = array<i32>} : memref<64x128xf32, #tpu.memory_space<vmem>>, vector<64x128xf32>,
    return
  }
  func.func @transform_0(%arg0: i32) -> (i32, i32) {
    %c0_i32 = arith.constant 0 : i32
    %c0_i32_0 = arith.constant 0 : i32
    return %arg0, %c0_i32 : i32, i32
  }
  func.func @transform_1(%arg0: i32) -> (i32, i32) {
    %c1_i32 = arith.constant 1 : i32
    %c0_i32 = arith.constant 0 : i32
    return %arg0, %c1_i32 : i32, i32
  }
  func.func @transform_2(%arg0: i32) -> (i32, i32) {
    %c0_i32 = arith.constant 0 : i32
    %c0_i32_0 = arith.constant 0 : i32
    return %arg0, %c0_i32 : i32, i32
  }
  func.func @transform_3(%arg0: i32) -> (i32, i32) {
    %c0_i32 = arith.constant 0 : i32
    %c0_i32_0 = arith.constant 0 : i32
    return %arg0, %c0_i32 : i32, i32
  }
}

</mosaic_0001>

<bundles_post_ra>
// kernel: tpu_custom_call.1
= control target key start
LH: loop header
LB: loop body
LE: loop exit
PB: predicated region body
PF: predicated region fallthrough
CT: control target
= control target key end

     0   :  { %s1052_s0 = inlined_call_operand.hbm [shape: f32[256,256], index: 0, kind: input, shape index: {}]   ;;  %s1053_s1 = inlined_call_operand.hbm [shape: f32[256,256], index: 1, kind: input, shape index: {}]   ;;  %s1054_s2 = inlined_call_operand.hbm [shape: f32[256,128], index: 2, kind: input, shape index: {}]   ;;  %s1055_s3 = inlined_call_operand.hbm [shape: f32[256,128], index: 3, kind: output, shape index: {}]  }
   0x1   :  { %1061 = sst [smem:[#allocation12_spill]] %s1052_s0 }
   0x2   :  { %8 = vsyncpa [#allocation3], 0 }
   0x3   :  { %10 = vsyncpa [#allocation3 + $0x1], 0 }
   0x4   :  { %11 = vsyncpa [#allocation6], 0 }
   0x5   :  { %13 = vsyncpa [#allocation6 + $0x1], 0 }
   0x6   :  { %14 = vsyncpa [#allocation4], 0 }
   0x7   :  { %16 = vsyncpa [#allocation4 + $0x1], 0  ;;  %s774_s12 = smov 0   ;;  %s776_s13 = smov 0  }
   0x8   :  { %s778_s14 = smov 0   ;;  %s780_s15 = smov 0  }
   0x9 LB: > { %s795_s16 = sadd.s32 4294967295, %s743_s15   ;;  %s477_s17 = sadd.s32 4294967294, %s743_s15   ;;  %s743_s15 = sphi %s780_s15, %s1079_s15   ;;  %s739_s14 = sphi %s778_s14, %s1078_s14   ;;  %s735_s13 = sphi %s776_s13, %s1077_s13   ;;  %s731_s12 = sphi %s774_s12, %s1076_s12  }
   0xa   : > { %s799_s18 = sadd.s32 1, %s743_s15   ;;  %s29_s19 = sadd.s32 1, %s739_s14 }
   0xb   : > { %s26_s20 = ssub.s32 %s743_s15, %s799_s18  ;;  %p36_p0 = scmp.ne.s32.totalorder %s739_s14, %s735_s13 }
   0xc   : > { %p27_p1 = scmp.eq.s32.totalorder %s26_s20, 0  ;;  %p37_p2 = scmp.eq.s32.totalorder %s743_s15, 0 }
   0xd   : > { %p42_p3 = scmp.ne.s32.totalorder %s735_s13, %s731_s12  ;;  %p43_p4 = scmp.eq.s32.totalorder %s795_s16, 0 }
   0xe   : > { %s811_s21 = scalar_select %p27_p1, %s739_s14, %s29_s19  }
   0xf   : > { %p38_p5 = por %p37_p2, %p36_p0  ;;  %p813_p6 = por %p43_p4, %p42_p3 }
  0x10   : > { %p118_p7 = scmp.eq.s32.totalorder %s795_s16, 3  ;;  %p124_p8 = scmp.eq.s32.totalorder %s477_s17, 3 }
  0x11   : > { %s1062_s22 = scalar_select %p813_p6, 1, 0 }
  0x12   : > { %p527_p9 = scmp.lt.s32.totalorder %s743_s15, 4  ;;  %p819_p10 = por %p118_p7, %p36_p0 }
  0x13   : > { %p823_p11 = por %p124_p8, %p42_p3  ;;  %s144_s25 = sand.u32 1, %s739_s14  }
  0x14   : > { %s1063_s23 = scalar_select %p819_p10, 1, 0 }
  0x15   : > { %s1064_s24 = scalar_select %p823_p11, 1, 0 }
  0x16   : > { %s501_s26 = sshll.u32 %s743_s15, 11  ;;  %s831_s27 = sshll.u32 %s144_s25, 6 }
  0x17   : > { %p833_p12 = pnand %p527_p9, %p38_p5  ;;  %s166_s29 = sand.u32 1, %s743_s15  }
  0x18   : > { %s399_s5 = scalar_lea.hbm %s1053_s1, %s501_s26  ;;  %s170_s7 = scalar_lea.vmem [#allocation5], %s831_s27 }
  0x19   : > { %s843_s6 = scalar_lea.hbm %s399_s5, 128  ;;  %s179_s8 = sshll.u32 %s170_s7, 4  ;;  %s846_s8 = int_to_ptr.vmem [resolvable:$true] %s179_s8 }
  0x1a   : > { %s849_s9 = scalar_lea.sflag [#allocation6], %s166_s29  ;;  %s612_s10 = scalar_lea.hbm %s399_s5, 1152 }
  0x1b   : > { %p583_p0 = scmp.ne.s32.totalorder %s843_s6, %s612_s10  ;;  %p854_p1 = pneg %p833_p12 }
  0x1c   : > { %s587_s20 = scalar_lea.hbm %s1053_s1, 8192  ;;  %p588_p4 = scmp.lt.u32.totalorder %s843_s6, %s1053_s1 }
  0x1d   : > { %p585_p2 = pnand %p854_p1, %p583_p0  ;;  %p589_p5 = scmp.lt.u32.totalorder %s587_s20, %s612_s10 }
  0x1e   : > { %p591_p8 = scmp.lt.u32.totalorder %s612_s10, %s843_s6 }
  0x1f   : > { %p586_p3 = pneg %p585_p2  ;;  %p590_p7 = por %p589_p5, %p588_p4 }
  0x21   : > { %p592_p9 = por %p591_p8, %p590_p7 }
  0x23   : > { %p593_p13 = pnand %p592_p9, %p586_p3 }
  0x25   : > { %596 = shalt.err (!%p593_p13)
}
  0x26   : > { %s597_s29 = scalar_lea.vmem %s846_s8, 1024  ;;  %s745_s5 = smov [#allocation5]  }
  0x27   : > { %p598_p0 = scmp.ne.s32.totalorder %s846_s8, %s597_s29  ;;  %s602_s7 = sshll.u32 %s745_s5, 4  ;;  %s603_s7 = int_to_ptr.vmem [resolvable:$false] %s602_s7 }
  0x28   : > { %s604_s17 = scalar_lea.vmem %s603_s7, 2048  ;;  %p605_p10 = scmp.lt.s32.totalorder %s846_s8, %s603_s7 }
  0x29   : > { %p600_p2 = pnand %p598_p0, %p854_p1  ;;  %p606_p6 = scmp.lt.s32.totalorder %s604_s17, %s597_s29 }
  0x2b   : > { %p601_p11 = pneg %p600_p2  ;;  %p607_p4 = por %p606_p6, %p605_p10 }
  0x2d   : > { %p608_p5 = pnand %p607_p4, %p601_p11 }
  0x2f   : > { %611 = shalt.err (!%p608_p5)
}
  0x30   : > { %s1058_s10 = smov 256   ;;  %s1059_s19 = smov 128  }
  0x31   : > { %s748_s20 = smov 8   ;;  %p208_p6 = scmp.lt.s32.totalorder %s743_s15, 5 }
  0x32   : > { %519 = dma.hbm_to_vmem [thread:$0]  (!%p833_p12), %s843_s6, 1024, %s846_s8, %s849_s9, %s1058_s10, %s1059_s19, %s748_s20  }
  0x33   : > { %s1067_s0 = sld [smem:[#allocation12_spill]]  ;;  %p1068_p10 = scmp.ge.s32.totalorder %s743_s15, 1 }
  0x34   : > { %s148_s7 = scalar_lea.vmem [#allocation2], %s831_s27  ;;  %s900_s6 = scalar_lea.sflag [#allocation3], %s144_s25 }
  0x35   : > { %p891_p11 = pnand %p1068_p10, %p208_p6  ;;  %s156_s17 = sshll.u32 %s148_s7, 4  ;;  %s896_s17 = int_to_ptr.vmem [resolvable:$true] %s156_s17 }
  0x37   : > { %s1069_s5 = scalar_select %p891_p11, 1, 0 }
  0x39   : > { %s887_s29 = scalar_lea.hbm %s1067_s0, %s501_s26  ;;  %s618_s4 = scalar_lea.hbm %s1067_s0, 8192 }
  0x3a   : > { %s613_s8 = scalar_lea.hbm %s887_s29, 1024  ;;  %p619_p8 = scmp.lt.u32.totalorder %s887_s29, %s1067_s0 }
  0x3b   : > { %p614_p13 = scmp.ne.s32.totalorder %s887_s29, %s613_s8  ;;  %p620_p9 = scmp.lt.u32.totalorder %s618_s4, %s613_s8 }
  0x3c   : > { %p622_p2 = scmp.lt.u32.totalorder %s613_s8, %s887_s29 }
  0x3d   : > { %p616_p3 = pnand %p614_p13, %p854_p1  ;;  %p621_p0 = por %p620_p9, %p619_p8 }
  0x3f   : > { %p617_p7 = pneg %p616_p3  ;;  %p623_p4 = por %p622_p2, %p621_p0 }
  0x41   : > { %p624_p5 = pnand %p623_p4, %p617_p7 }
  0x43   : > { %627 = shalt.err (!%p624_p5)
}
  0x44   : > { %s628_s25 = scalar_lea.vmem %s896_s17, 1024  ;;  %s749_s7 = smov [#allocation2]  }
  0x45   : > { %p629_p6 = scmp.ne.s32.totalorder %s896_s17, %s628_s25  ;;  %s633_s26 = sshll.u32 %s749_s7, 4  ;;  %s634_s26 = int_to_ptr.vmem [resolvable:$false] %s633_s26 }
  0x46   : > { %s635_s10 = scalar_lea.vmem %s634_s26, 2048  ;;  %p636_p3 = scmp.lt.s32.totalorder %s896_s17, %s634_s26 }
  0x47   : > { %p631_p10 = pnand %p629_p6, %p854_p1  ;;  %p637_p11 = scmp.lt.s32.totalorder %s635_s10, %s628_s25 }
  0x49   : > { %p632_p13 = pneg %p631_p10  ;;  %p638_p8 = por %p637_p11, %p636_p3 }
  0x4b   : > { %p639_p9 = pnand %p638_p8, %p632_p13 }
  0x4d   : > { %642 = shalt.err (!%p639_p9)
}
  0x4e   : > { %s1070_s19 = smov 128   ;;  %s1071_s8 = smov 256  }
  0x4f   : > { %516 = dma.hbm_to_vmem [thread:$0]  (!%p833_p12), %s887_s29, 1024, %s896_s17, %s900_s6, %s1071_s8, %s1070_s19, %s748_s20  }
  0x50   : > { %s503_s30 = sshll.u32 %s743_s15, 10  ;;  %s193_s4 = scalar_lea.vmem [#allocation7], %s831_s27 }
  0x51   : > { %s200_s7 = sshll.u32 %s193_s4, 4  ;;  %s932_s10 = scalar_lea.hbm %s1054_s2, %s503_s30  ;;  %s934_s7 = int_to_ptr.vmem [resolvable:$true] %s200_s7 }
  0x52   : > { %s643_s0 = scalar_lea.hbm %s932_s10, 1024  ;;  %s648_s27 = scalar_lea.hbm %s1054_s2, 4096 }
  0x53   : > { %p644_p11 = scmp.ne.s32.totalorder %s932_s10, %s643_s0  ;;  %p649_p2 = scmp.lt.u32.totalorder %s932_s10, %s1054_s2 }
  0x54   : > { %p650_p4 = scmp.lt.u32.totalorder %s648_s27, %s643_s0  ;;  %p652_p6 = scmp.lt.u32.totalorder %s643_s0, %s932_s10 }
  0x55   : > { %p646_p7 = pnand %p644_p11, %p854_p1 }
  0x56   : > { %p651_p5 = por %p650_p4, %p649_p2 }
  0x57   : > { %p647_p0 = pneg %p646_p7 }
  0x58   : > { %p653_p10 = por %p652_p6, %p651_p5 }
  0x5a   : > { %p654_p13 = pnand %p653_p10, %p647_p0 }
  0x5c   : > { %657 = shalt.err (!%p654_p13)
}
  0x5d   : > { %s658_s30 = scalar_lea.vmem %s934_s7, 1024  ;;  %s750_s4 = smov [#allocation7]  }
  0x5e   : > { %p659_p3 = scmp.ne.s32.totalorder %s934_s7, %s658_s30  ;;  %s663_s26 = sshll.u32 %s750_s4, 4  ;;  %s664_s26 = int_to_ptr.vmem [resolvable:$false] %s663_s26 }
  0x5f   : > { %s665_s25 = scalar_lea.vmem %s664_s26, 2048  ;;  %p666_p11 = scmp.lt.s32.totalorder %s934_s7, %s664_s26 }
  0x60   : > { %p661_p8 = pnand %p659_p3, %p854_p1  ;;  %p667_p7 = scmp.lt.s32.totalorder %s665_s25, %s658_s30 }
  0x62   : > { %p662_p9 = pneg %p661_p8  ;;  %p668_p2 = por %p667_p7, %p666_p11 }
  0x64   : > { %p669_p4 = pnand %p668_p2, %p662_p9 }
  0x66   : > { %672 = shalt.err (!%p669_p4)
}
  0x67   : > { %522 = dma.hbm_to_vmem [thread:$0]  (!%p833_p12), %s932_s10, 1024, %s934_s7, %s849_s9, %s1070_s19, %s1070_s19, %s748_s20  }
  0x68   : > { %p1072_p1 = scmp.ne.s32.totalorder %s1069_s5, 0 }
  0x69   : > { %s964_s0 = sand.u32 (!%p1072_p1), 1, %s735_s13   ;;  %p1073_p0 = scmp.ne.s32.totalorder (!%p1072_p1), %s1062_s22, 0 }
  0x6a   : > { %212 = sbr.rel (%p1072_p1) target bundleno = 159 (0x9f), region = 32  ;;  %s967_s11 = sshll.u32 (!%p1072_p1), %s964_s0, 6 }
  0x6b   : > { %s215_s28 = scalar_lea.sflag (!%p1072_p1), [#allocation3], %s964_s0  ;;  %s971_s29 = scalar_lea.vmem (!%p1072_p1), [#allocation2], %s967_s11 }
  0x71   : > { %718 = dma.done.wait (%p1073_p0), %s215_s28, 1024  }
  0x72   : > { %720 = vsyncadd (%p1073_p0), %s215_s28, 4294966272  ;;  %s223_s9 = sand.u32 1, %s795_s16   ;;  %s227_s5 = scalar_lea.vmem [#allocation5], %s967_s11 }
  0x73   : > { %s224_s20 = scalar_lea.sflag [#allocation6], %s223_s9 }
  0x74   : > { %722 = dma.done.wait (%p1073_p0), %s224_s20, 2048  }
  0x75   : > { %724 = vsyncadd (%p1073_p0), %s224_s20, 4294965248  ;;  %v281_v0 = vld [vmem:[%s227_s5] sm:$0xff]  ;;  %v282_v2 = vld [vmem:[%s227_s5 + $0x8] sm:$0xff]  ;;  %s984_s22 = scalar_lea.vmem [#allocation7], %s967_s11  ;;  %s268_s19 = scalar_lea.vmem [#allocation8], %s967_s11 }
  0x76   : > { %v297_v1 = vmul.f32 0.5, %v281_v0  ;;  %v298_v3 = vmul.f32 0.5, %v282_v2  ;;  %v283_v4 = vld [vmem:[%s227_s5 + $0x10] sm:$0xff]  ;;  %v284_v7 = vld [vmem:[%s227_s5 + $0x18] sm:$0xff]  ;;  %v285_v10 = vld [vmem:[%s227_s5 + $0x20] sm:$0xff]  ;;  %s359_s7 = sshll.u32 %s268_s19, 4  ;;  %s1004_s7 = int_to_ptr.vmem [resolvable:$true] %s359_s7 }
  0x77   : > { %v299_v6 = vmul.f32 0.5, %v283_v4  ;;  %v300_v9 = vmul.f32 0.5, %v284_v7  ;;  %v301_v12 = vmul.f32 0.5, %v285_v10  ;;  %v286_v13 = vld [vmem:[%s227_s5 + $0x28] sm:$0xff]  ;;  %v287_v16 = vld [vmem:[%s227_s5 + $0x30] sm:$0xff]  ;;  %v288_v19 = vld [vmem:[%s227_s5 + $0x38] sm:$0xff] }
  0x78   : > { %v305_v5 = vmul.f32 1.442695, %v297_v1  ;;  %v307_v8 = vmul.f32 1.442695, %v298_v3  ;;  %v302_v15 = vmul.f32 0.5, %v286_v13  ;;  %v303_v18 = vmul.f32 0.5, %v287_v16 }
  0x79   : > { %v309_v11 = vmul.f32 1.442695, %v299_v6  ;;  %v311_v14 = vmul.f32 1.442695, %v300_v9  ;;  %v313_v17 = vmul.f32 1.442695, %v301_v12 }
  0x7a   : > { %566 = vpow2.f32 %v305_v5  ;;  %v315_v20 = vmul.f32 1.442695, %v302_v15  ;;  %v304_v21 = vmul.f32 0.5, %v288_v19  ;;  %v317_v22 = vmul.f32 1.442695, %v303_v18  ;;  %v289_v24 = vld [vmem:[%s984_s22] sm:$0xff] }
  0x7b   : > { %568 = vpow2.f32 %v307_v8  ;;  %v290_v25 = vld [vmem:[%s984_s22 + $0x8] sm:$0xff]  ;;  %v273_v27 = vld [vmem:[%s971_s29] sm:$0xff]  ;;  %v291_v28 = vld [vmem:[%s984_s22 + $0x10] sm:$0xff]  ;;  %s504_s10 = sshll.u32 %s795_s16, 10  ;;  %s346_s6 = scalar_lea.sflag [#allocation4], %s964_s0 }
  0x7c   : > { %570 = vpow2.f32 %v309_v11  ;;  %v319_v23 = vmul.f32 1.442695, %v304_v21  ;;  %v274_v31 = vld [vmem:[%s971_s29 + $0x8] sm:$0xff]  ;;  %v292_v32 = vld [vmem:[%s984_s22 + $0x18] sm:$0xff]  ;;  %v275_v35 = vld [vmem:[%s971_s29 + $0x10] sm:$0xff]  ;;  %s1009_s16 = scalar_lea.hbm %s1055_s3, %s504_s10  ;;  %s673_s8 = scalar_lea.vmem %s1004_s7, 1024 }
  0x7d   : > { %572 = vpow2.f32 %v311_v14  ;;  %v293_v36 = vld [vmem:[%s984_s22 + $0x20] sm:$0xff]  ;;  %v276_v40 = vld [vmem:[%s971_s29 + $0x18] sm:$0xff]  ;;  %v294_v41 = vld [vmem:[%s984_s22 + $0x28] sm:$0xff]  ;;  %p674_p12 = scmp.ne.s32.totalorder %s1004_s7, %s673_s8  ;;  %p1074_p5 = scmp.ne.s32.totalorder %s1063_s23, 0 }
  0x7e   : > { %574 = vpow2.f32 %v313_v17  ;;  %v277_v45 = vld [vmem:[%s971_s29 + $0x20] sm:$0xff]  ;;  %v295_v46 = vld [vmem:[%s984_s22 + $0x30] sm:$0xff]  ;;  %v278_v50 = vld [vmem:[%s971_s29 + $0x28] sm:$0xff]  ;;  %s751_s30 = smov [#allocation8]  }
  0x7f   : > { %576 = vpow2.f32 %v315_v20  ;;  %v296_v51 = vld [vmem:[%s984_s22 + $0x38] sm:$0xff]  ;;  %v279_v55 = vld [vmem:[%s971_s29 + $0x30] sm:$0xff]  ;;  %p675_p6 = pnand %p674_p12, %p1074_p5  ;;  %s677_s4 = sshll.u32 %s751_s30, 4  ;;  %s678_s4 = int_to_ptr.vmem [resolvable:$false] %s677_s4 }
  0x80   : > { %578 = vpow2.f32 %v317_v22  ;;  %v280_v59 = vld [vmem:[%s971_s29 + $0x38] sm:$0xff]  ;;  %s679_s26 = scalar_lea.vmem %s678_s4, 2048  ;;  %p680_p13 = scmp.lt.s32.totalorder %s1004_s7, %s678_s4 }
  0x81   : > { %580 = vpow2.f32 %v319_v23  ;;  %p676_p10 = pneg %p675_p6  ;;  %p681_p3 = scmp.lt.s32.totalorder %s679_s26, %s673_s8 }
  0x83   : > { %p682_p8 = por %p681_p3, %p680_p13 }
  0x84   : > { %v567_v26 = vpop.eup %566 }
  0x85   : > { %v569_v29 = vpop.eup %568  ;;  %v321_v30 = vmul.f32 %v567_v26, %v289_v24  ;;  %p683_p9 = pnand %p682_p8, %p676_p10 }
  0x86   : > { %v571_v33 = vpop.eup %570  ;;  %v322_v34 = vmul.f32 %v569_v29, %v290_v25 }
  0x87   : > { %v573_v37 = vpop.eup %572  ;;  %v329_v38 = vadd.f32 %v321_v30, %v273_v27  ;;  %v323_v39 = vmul.f32 %v571_v33, %v291_v28 }
  0x88   : > { %v575_v42 = vpop.eup %574  ;;  %v330_v43 = vadd.f32 %v322_v34, %v274_v31  ;;  %v324_v44 = vmul.f32 %v573_v37, %v292_v32 }
  0x89   : > { %v577_v47 = vpop.eup %576  ;;  %337 = vst [vmem:[%s268_s19] sm:$0xff] %v329_v38  ;;  %v331_v48 = vadd.f32 %v323_v39, %v275_v35  ;;  %v325_v49 = vmul.f32 %v575_v42, %v293_v36 }
  0x8a   : > { %v579_v52 = vpop.eup %578  ;;  %338 = vst [vmem:[%s268_s19 + $0x8] sm:$0xff] %v330_v43  ;;  %v332_v53 = vadd.f32 %v324_v44, %v276_v40  ;;  %v326_v54 = vmul.f32 %v577_v47, %v294_v41 }
  0x8b   : > { %v581_v56 = vpop.eup %580  ;;  %339 = vst [vmem:[%s268_s19 + $0x10] sm:$0xff] %v331_v48  ;;  %v333_v57 = vadd.f32 %v325_v49, %v277_v45  ;;  %v327_v58 = vmul.f32 %v579_v52, %v295_v46 }
  0x8c   : > { %340 = vst [vmem:[%s268_s19 + $0x18] sm:$0xff] %v332_v53  ;;  %v334_v60 = vadd.f32 %v326_v54, %v278_v50  ;;  %v328_v61 = vmul.f32 %v581_v56, %v296_v51 }
  0x8d   : > { %341 = vst [vmem:[%s268_s19 + $0x20] sm:$0xff] %v333_v57  ;;  %v335_v62 = vadd.f32 %v327_v58, %v279_v55 }
  0x8e   : > { %342 = vst [vmem:[%s268_s19 + $0x28] sm:$0xff] %v334_v60  ;;  %v336_v63 = vadd.f32 %v328_v61, %v280_v59 }
  0x8f   : > { %343 = vst [vmem:[%s268_s19 + $0x30] sm:$0xff] %v335_v62 }
  0x90   : > { %344 = vst [vmem:[%s268_s19 + $0x38] sm:$0xff] %v336_v63 }
  0x91   : > { %686 = shalt.err (!%p683_p9)
}
  0x92   : > { %s687_s25 = scalar_lea.hbm %s1009_s16, 1024  ;;  %s691_s29 = scalar_lea.hbm %s1055_s3, 4096 }
  0x93   : > { %p688_p11 = scmp.ne.s32.totalorder %s1009_s16, %s687_s25  ;;  %p692_p4 = scmp.lt.u32.totalorder %s1009_s16, %s1055_s3 }
  0x94   : > { %p693_p1 = scmp.lt.u32.totalorder %s691_s29, %s687_s25  ;;  %p695_p12 = scmp.lt.u32.totalorder %s687_s25, %s1009_s16 }
  0x95   : > { %p689_p7 = pnand %p688_p11, %p1074_p5 }
  0x96   : > { %p694_p0 = por %p693_p1, %p692_p4 }
  0x97   : > { %p690_p2 = pneg %p689_p7 }
  0x98   : > { %p696_p6 = por %p695_p12, %p694_p0 }
  0x9a   : > { %p697_p10 = pnand %p696_p6, %p690_p2 }
  0x9c   : > { %700 = shalt.err (!%p697_p10)
}
  0x9d   : > { %s752_s5 = smov 128   ;;  %s753_s22 = smov 8  }
  0x9e   : > { %511 = dma.vmem_to_hbm [thread:$0]  (%p1074_p5), %s1004_s7, 1024, %s1009_s16, %s346_s6, %s752_s5, %s752_s5, %s753_s22  }
  0x9f PF: > { %p528_p13 = scmp.ge.s32.totalorder %s743_s15, 2  ;;  %s374_s19 = sand.u32 1, %s731_s12  }
  0xa0   : > { %p1075_p3 = scmp.ne.s32.totalorder %s1064_s24, 0  ;;  %s375_s10 = scalar_lea.sflag [#allocation4], %s374_s19 }
  0xa2   : > { %p524_p8 = pnand %p528_p13, %p1075_p3 }
  0xa4   : > { %726 = dma.done.wait (!%p524_p8), %s375_s10, 1024  }
  0xa5   : > { %728 = vsyncadd (!%p524_p8), %s375_s10, 4294966272  ;;  %p19_p9 = scmp.ge.s32.totalorder %s799_s18, 6   ;;  %s1076_s12 = smov %s735_s13 }
  0xa6   : > { %s1077_s13 = smov %s739_s14  ;;  %s1078_s14 = smov %s811_s21 }
  0xa7   : > { %s1079_s15 = smov %s799_s18  ;;  %21 = sbr.rel (!%p19_p9) target bundleno = 9 (0x9), region = 101 }
  0xae   :  { %380 = vsyncpa [#allocation3], 1 }
  0xaf   :  { %382 = vsyncpa [#allocation3 + $0x1], 1 }
  0xb0   :  { %383 = vsyncpa [#allocation6], 1 }
  0xb1   :  { %385 = vsyncpa [#allocation6 + $0x1], 1 }
  0xb2   :  { %386 = vsyncpa [#allocation4], 1 }
  0xb3   :  { %388 = vsyncpa [#allocation4 + $0x1], 1 }

</bundles_post_ra>
